<compile_context>
chip_gen: v6e
topology: v6e:2x2x1
jax: 0.10.0
libtpu: 0.0.40
codegen_flags: <defaults>
</compile_context>

<pallas_src>
import jax
import jax.numpy as jnp
from jax.experimental import pallas as pl
from jax.experimental.pallas import tpu as pltpu  # noqa: F401  (TPU backend)

IN_F = 16
OUT_F = 64
B = 2                          # rows of x2 (Linear batch)
C = 8                          # broadcast dim of x1
X1_SHAPE = (1, C, B, OUT_F)    # broadcast-compatible with Linear output (B, OUT_F)
LANES = B * OUT_F              # 128  -> exactly one vreg lane width
K_FLAT = B * IN_F              # 32


def _model_kernel(x1_ref, x2_ref, w_ref, b_ref, out_ref):
    # Linear in the flattened layout: (1, 32) @ (32, 128) -> (1, 128).
    # W' is block-diagonal so both batch rows of the original (2,16)@(16,64)
    # land side-by-side, already lane-dense, with no in-kernel relayout.
    v1 = jnp.dot(x2_ref[...], w_ref[...], preferred_element_type=jnp.float32)
    v1 = v1 + b_ref[...]                                   # (1, 128)
    # v2 = v1 - x1: sublane-broadcast the single lane-dense row across the
    # 8 rows -> one VPU subtract, one unmasked (8,128) store.
    out_ref[...] = jnp.broadcast_to(v1, out_ref.shape) - x1_ref[...]


def build_params(w, b):
    """Pre-build (once, outside the hot path) the lane-dense params."""
    w_blk = jnp.zeros((K_FLAT, LANES), w.dtype)            # blkdiag(W, W): (32, 128)
    for i in range(B):
        w_blk = w_blk.at[i * IN_F:(i + 1) * IN_F,
                         i * OUT_F:(i + 1) * OUT_F].set(w)
    b_flat = jnp.tile(b.reshape(1, OUT_F), (1, B))         # [b, b]: (1, 128)
    return w_blk, b_flat


@jax.jit
def model_forward(x1, x2, w_blk, b_flat):
    """x1: (1, C, B, OUT_F); x2: (B, IN_F); w_blk: (32, 128); b_flat: (1, 128)."""
    x1_flat = x1.reshape(C, LANES)      # contiguous relabel -> (8, 128), zero cost
    x2_flat = x2.reshape(1, K_FLAT)     # (1, 32)
    out_flat = pl.pallas_call(
        _model_kernel,
        out_shape=jax.ShapeDtypeStruct((C, LANES), jnp.float32),
        # No grid: single invocation, all operands VMEM-resident; avoids the
        # per-step pipeline prologue/epilogue of a degenerate grid=(1,).
        input_output_aliases={0: 0},    # output reuses x1_flat's buffer
    )(x1_flat, x2_flat, w_blk, b_flat)
    return out_flat.reshape(X1_SHAPE)


if __name__ == "__main__":
    key = jax.random.PRNGKey(0)
    k1, k2, k3, k4 = jax.random.split(key, 4)

    # Deterministic params (mimics nn.Linear uniform(-1/sqrt(16), 1/sqrt(16)))
    bound = 1.0 / (IN_F ** 0.5)
    w = jax.random.uniform(k1, (IN_F, OUT_F), jnp.float32, -bound, bound)
    b = jax.random.uniform(k2, (OUT_F,), jnp.float32, -bound, bound)

    # Small example inputs consistent with the forward (x1 chosen broadcast-
    # compatible with the (2, 64) Linear output).
    x1 = jax.random.normal(k3, X1_SHAPE, jnp.float32)
    x2 = jax.random.normal(k4, (B, IN_F), jnp.float32)

    # Reference (plain JAX) computed before the kernel, since the kernel
    # output is aliased onto x1's buffer.
    ref = (x2 @ w + b)[None, None, :, :] - x1
    ref = jax.block_until_ready(ref)

    w_blk, b_flat = build_params(w, b)          # built once, outside the hot path
    out = model_forward(x1, x2, w_blk, b_flat)
    out = jax.block_until_ready(out)

    assert out.shape == X1_SHAPE
    assert jnp.allclose(out, ref, atol=1e-5, rtol=1e-5)

    print("KERNEL_OK")
</pallas_src>

<mosaic_0001>
module attributes {stable_mosaic.version = 11 : i64} {
  func.func @_model_kernel(%arg0: memref<8x128xf32, #tpu.memory_space<vmem>>, %arg1: memref<1x32xf32, #tpu.memory_space<vmem>>, %arg2: memref<32x128xf32, #tpu.memory_space<vmem>>, %arg3: memref<1x128xf32, #tpu.memory_space<vmem>>, %arg4: memref<8x128xf32, #tpu.memory_space<vmem>>) attributes {dimension_semantics = [], scalar_prefetch = 0 : i64, scratch_operands = 0 : i64, tpu.core_type = #tpu.core_type<tc>} {
    %c0 = arith.constant 0 : index
    %c0_0 = arith.constant 0 : index
    %0 = vector.load %arg1[%c0, %c0_0] : memref<1x32xf32, #tpu.memory_space<vmem>>, vector<1x32xf32>
    %c0_1 = arith.constant 0 : index
    %c0_2 = arith.constant 0 : index
    %1 = vector.load %arg2[%c0_1, %c0_2] : memref<32x128xf32, #tpu.memory_space<vmem>>, vector<32x128xf32>
    %cst = arith.constant dense<0.000000e+00> : vector<1x128xf32>
    %2 = tpu.matmul %0, %1, %cst {dimension_numbers = #tpu.dot_dimension_numbers<[1], [0], [0], [1], [0, 0, 1, 1], [], []>} : vector<1x32xf32>, vector<32x128xf32>, vector<1x128xf32> -> vector<1x128xf32>
    %c0_3 = arith.constant 0 : index
    %c0_4 = arith.constant 0 : index
    %3 = vector.load %arg3[%c0_3, %c0_4] : memref<1x128xf32, #tpu.memory_space<vmem>>, vector<1x128xf32>
    %4 = arith.addf %2, %3 : vector<1x128xf32>
    %5 = vector.shape_cast %4 : vector<1x128xf32> to vector<1x128xf32>
    %6 = vector.broadcast %5 : vector<1x128xf32> to vector<8x128xf32>
    %c0_5 = arith.constant 0 : index
    %c0_6 = arith.constant 0 : index
    %7 = vector.load %arg0[%c0_5, %c0_6] : memref<8x128xf32, #tpu.memory_space<vmem>>, vector<8x128xf32>
    %8 = arith.subf %6, %7 : vector<8x128xf32>
    %c0_7 = arith.constant 0 : index
    %c0_8 = arith.constant 0 : index
    %9 = vector.load %arg4[%c0_7, %c0_8] : memref<8x128xf32, #tpu.memory_space<vmem>>, vector<8x128xf32>
    tpu.vector_store %arg4[%c0_7, %c0_8], %8 {strides = array<i32>} : memref<8x128xf32, #tpu.memory_space<vmem>>, vector<8x128xf32>,
    return
  }
}

</mosaic_0001>

<bundles_post_ra>
// kernel: model_forward.1
= control target key start
LH: loop header
LB: loop body
LE: loop exit
PB: predicated region body
PF: predicated region fallthrough
CT: control target
= control target key end

     0   :  { %9 = vsyncpa [#allocation3], 0  ;;  %s167_s15 = smov [#allocation2]   ;;  %s212_s0 = inlined_call_operand.vmem [shape: f32[8,128], index: 0, kind: input, shape index: {}, may-alias: {0,4}]   ;;  %s213_s1 = inlined_call_operand.vmem [shape: f32[1,32], index: 1, kind: input, shape index: {}]   ;;  %s214_s2 = inlined_call_operand.hbm [shape: f32[32,128], index: 2, kind: input, shape index: {}]   ;;  %s215_s3 = inlined_call_operand.vmem [shape: f32[1,128], index: 3, kind: input, shape index: {}]   ;;  %s216_s4 = inlined_call_operand.vmem [shape: f32[8,128], index: 4, kind: output, shape index: {}, may-alias: {0,4}]  }
   0x1   :  { %s19_s16 = sshll.u32 %s167_s15, 4  ;;  %s20_s16 = int_to_ptr.vmem [resolvable:$true] %s19_s16 }
   0x2   :  { %s153_s17 = scalar_lea.vmem %s20_s16, 512  ;;  %p158_p1 = scmp.lt.s32.totalorder %s20_s16, %s20_s16 }
   0x3   :  { %p154_p0 = scmp.ne.s32.totalorder %s20_s16, %s153_s17  ;;  %p159_p2 = scmp.lt.s32.totalorder %s153_s17, %s153_s17 }
   0x5   :  { %p160_p3 = por %p159_p2, %p158_p1 }
   0x7   :  { %p161_p4 = pnand %p160_p3, %p154_p0 }
   0x9   :  { %164 = shalt.err (!%p161_p4)
}
   0xa   :  { %s168_s18 = smov 128   ;;  %s169_s19 = smov 8  }
   0xb   :  { %25 = dma.hbm_to_vmem [thread:$0]  %s214_s2, 512, %s20_s16, [#allocation3], %s168_s18, %s168_s18, %s169_s19  }
   0xc   :  { %165 = dma.done.wait [#allocation3], 512  }
   0xd   :  { %166 = vsyncadd [#allocation3], 4294966784  ;;  %v170_v0 = vmov 0.0   ;;  %vm171_vm0 = vmmov 0   ;;  %v35_v1 = vld [vmem:[#allocation2 + $0x18] sm:$0xff]  ;;  %v34_v2 = vld [vmem:[#allocation2 + $0x10] sm:$0xff]  ;;  %v111_v6 = vlaneseq }
   0xe   :  { %129 = vmatprep.subr.mxu0 %v170_v0  ;;  %137 = vmatprep.mubr.msk.f32.mxu0 %vm171_vm0, %v170_v0  ;;  %v33_v3 = vld [vmem:[#allocation2 + $0x8] sm:$0xff]  ;;  %v32_v4 = vld [vmem:[#allocation2] sm:$0xff]  ;;  %vm37_vm1 = vcmask 261120  }
   0xf   :  { %130 = vmatpush3.msra.mxu0 %v35_v1  ;;  %v31_v5 = vld [vmem:[%s213_s1] sm:$0x1]  ;;  %v112_v7 = vshrl.u32 %v111_v6, 7 }
  0x10   :  { %131 = vmatprep.subr.mxu0 %v170_v0  ;;  %v36_v8 = vld [vmem:[%s215_s3] sm:$0x1] }
  0x11   :  { %132 = vmatpush3.msra.mxu0 %v34_v2  ;;  %v113_v9 = vsub.s32 0, %v112_v7  ;;  %v115_v12 = vld [vmem:[%s212_s0] sm:$0xff] }
  0x12   :  { %133 = vmatprep.subr.mxu0 %v170_v0 }
  0x13   :  { %134 = vmatpush3.msra.mxu0 %v33_v3 }
  0x14   :  { %135 = vmatprep.subr.mxu0 %v170_v0 }
  0x15   :  { %136 = vmatpush3.msra.mxu0 %v32_v4 }
  0x16   :  { %138 = vmatmul.mubr.msk.f32.vlgmr.msra.gmra.mxu0 %vm37_vm1, %v31_v5 }
  0xd6   :  { %v107_v10 = vpop.f32.mrf.mxu0 }
  0xd7   :  { %v108_v11 = vadd.f32 %v107_v10, %v36_v8 }
  0xd8   :  { %v139_v13 = vpop.f32.mrf.mxu0 }
  0xd9   :  { %v114_v14 = vrot.slane %v108_v11, %v113_v9 }
  0xdb   :  { %v116_v15 = vsub.f32 %v114_v14, %v115_v12 }
  0xdd   :  { %117 = vst [vmem:[%s216_s4] sm:$0xff] %v116_v15 }
  0xde   :  { %122 = vsyncpa [#allocation3], 1 }

</bundles_post_ra>
